<compile_context>
chip_gen: v7x
topology: tpu7x:2x2x1
jax: 0.10.0
libtpu: 0.0.40
codegen_flags: <defaults>
</compile_context>

<pallas_src>
import jax
import jax.numpy as jnp
from jax.experimental import pallas as pl
from jax.experimental.pallas import tpu as pltpu


def _round_up(x, m):
    return ((x + m - 1) // m) * m


def gcn_kernel(adj_ref, h_ref, w_ref, b_ref, out_ref, acc_ref):
    """One (row-block i, reduction-block k) grid step.

    adj_ref : (tm, tk)  bf16   A_eff tile (rows = destination nodes)
    h_ref   : (tk, Fp)  bf16   source-node feature tile
    w_ref   : (Fp, Op)  f32    transposed Linear weight (resident)
    b_ref   : (1,  Op)  f32    bias (resident)
    out_ref : (tm, Op)  f32    output tile (resident across k)
    acc_ref : (tm, Fp)  f32    VMEM accumulator for the h_new row block
    """
    k = pl.program_id(1)

    @pl.when(k == 0)
    def _():
        acc_ref[...] = jnp.zeros_like(acc_ref)

    # Aggregation: h_new[i_block] += A_eff[i_block, k_block] @ H[k_block]
    acc_ref[...] += jnp.dot(
        adj_ref[...], h_ref[...], preferred_element_type=jnp.float32
    )

    @pl.when(k == pl.num_programs(1) - 1)
    def _():
        # Fused Linear layer: out = h_new @ W^T + b   (no HBM round-trip).
        out_ref[...] = (
            jnp.dot(acc_ref[...], w_ref[...], preferred_element_type=jnp.float32)
            + b_ref[...]
        )


def gcn_layer(adj_eff, feat, w_t, bias, *, tm=256, tk=512):
    """adj_eff: (N, N), feat: (N, F), w_t: (F, O), bias: (O,) -> (N, O) f32."""
    N, F = feat.shape
    O = w_t.shape[1]

    # Clamp tile sizes for small graphs; 128 alignment is valid for f32 & bf16.
    tm = min(tm, _round_up(N, 128))
    tk = min(tk, _round_up(N, 128))
    Nm = _round_up(N, tm)           # padded destination-node (row) dim
    Nk = _round_up(N, tk)           # padded source-node (reduction) dim
    Fp = _round_up(F, 128)          # lane-dense hidden dim
    Op = _round_up(O, 128)          # lane-dense output dim (unmasked stores)

    # Pad + cast the two big streams to bf16 (f32 accumulation on the MXU).
    adj_p = jnp.zeros((Nm, Nk), jnp.bfloat16).at[:N, :N].set(
        adj_eff.astype(jnp.bfloat16)
    )
    feat_p = jnp.zeros((Nk, Fp), jnp.bfloat16).at[:N, :F].set(
        feat.astype(jnp.bfloat16)
    )
    # Small resident operands stay f32 for the Linear layer's precision.
    w_p = jnp.zeros((Fp, Op), jnp.float32).at[:F, :O].set(w_t.astype(jnp.float32))
    b_p = jnp.zeros((1, Op), jnp.float32).at[0, :O].set(bias.astype(jnp.float32))

    grid = (Nm // tm, Nk // tk)     # (row blocks: parallel, reduction: last)

    cost = pl.CostEstimate(
        flops=2 * Nm * Nk * Fp + 2 * Nm * Fp * Op,
        transcendentals=0,
        bytes_accessed=(
            adj_p.size * 2 + feat_p.size * 2 + w_p.size * 4 + b_p.size * 4
            + Nm * Op * 4
        ),
    )

    out_p = pl.pallas_call(
        gcn_kernel,
        out_shape=jax.ShapeDtypeStruct((Nm, Op), jnp.float32),
        grid_spec=pltpu.PrefetchScalarGridSpec(
            num_scalar_prefetch=0,
            grid=grid,
            in_specs=[
                pl.BlockSpec((tm, tk), lambda i, k: (i, k)),   # A_eff tile
                pl.BlockSpec((tk, Fp), lambda i, k: (k, 0)),   # feature tile
                pl.BlockSpec((Fp, Op), lambda i, k: (0, 0)),   # W^T (resident)
                pl.BlockSpec((1, Op), lambda i, k: (0, 0)),    # bias (resident)
            ],
            out_specs=pl.BlockSpec((tm, Op), lambda i, k: (i, 0)),
            scratch_shapes=[pltpu.VMEM((tm, Fp), jnp.float32)],
        ),
        compiler_params=pltpu.CompilerParams(
            dimension_semantics=("parallel", "arbitrary"),
        ),
        cost_estimate=cost,
    )(adj_p, feat_p, w_p, b_p)

    return out_p[:N, :O]


if __name__ == "__main__":
    key = jax.random.PRNGKey(0)
    N, in_feats, out_feats = 16, 32, 8
    k1, k2, k3, k4, k5, k6 = jax.random.split(key, 6)

    # Node features (g.ndata['h'] = feature)
    feat = jax.random.normal(k1, (N, in_feats), dtype=jnp.float32)

    # Graph data: mask[i, j] = 1 means edge j -> i exists; force in-degree >= 1
    mask = (jax.random.uniform(k2, (N, N)) < 0.3).astype(jnp.float32)
    mask = mask.at[jnp.arange(N), (jnp.arange(N) + 1) % N].set(1.0)
    edge_w = jax.random.normal(k3, (N, N), dtype=jnp.float32)   # edges.data['weight']
    self_w = jax.random.normal(k4, (N,), dtype=jnp.float32)     # nodes.data['self_weight']

    # Effective dense operator for update_all(send_source, simple_reduce)
    adj_eff = mask * (edge_w + 1.0) + jnp.diag(self_w + 1.0)

    # nn.Linear(in_feats, out_feats) parameters, deterministic init
    w = jax.random.normal(k5, (out_feats, in_feats), dtype=jnp.float32) * 0.1
    b = jax.random.normal(k6, (out_feats,), dtype=jnp.float32) * 0.1

    out = gcn_layer(adj_eff, feat, w.T, b)
    out = jax.block_until_ready(out)

    # Reference that mirrors the kernel's bf16 input rounding / f32 accumulation
    h_new_ref = jnp.dot(
        adj_eff.astype(jnp.bfloat16), feat.astype(jnp.bfloat16),
        preferred_element_type=jnp.float32,
    )
    ref = h_new_ref @ w.T + b
    # Full-precision f32 reference (loose tolerance accounts for bf16 stream)
    ref_f32 = (adj_eff @ feat) @ w.T + b

    assert out.shape == (N, out_feats)
    assert jnp.allclose(out, ref, atol=1e-3, rtol=1e-3), "mismatch vs bf16 reference"
    assert jnp.allclose(out, ref_f32, atol=1e-1, rtol=1e-1), "mismatch vs f32 reference"

    print("KERNEL_OK")
</pallas_src>

<mosaic_0001>
module attributes {stable_mosaic.version = 11 : i64} {
  func.func @gcn_kernel(%arg0: i32, %arg1: i32, %arg2: memref<128x128xbf16, #tpu.memory_space<vmem>>, %arg3: memref<128x128xbf16, #tpu.memory_space<vmem>>, %arg4: memref<128x128xf32, #tpu.memory_space<vmem>>, %arg5: memref<1x128xf32, #tpu.memory_space<vmem>>, %arg6: memref<128x128xf32, #tpu.memory_space<vmem>>, %arg7: memref<128x128xf32, #tpu.memory_space<vmem>>) attributes {dimension_semantics = [#tpu.dimension_semantics<parallel>, #tpu.dimension_semantics<arbitrary>], iteration_bounds = array<i64: 1, 1>, scalar_prefetch = 0 : i64, scratch_operands = 1 : i64, tpu.core_type = #tpu.core_type<tc>, window_params = [{transform_indices = @transform_0, window_bounds = array<i64: 128, 128>}, {transform_indices = @transform_1, window_bounds = array<i64: 128, 128>}, {pipeline_mode = #tpu.pipeline_mode<synchronous>, transform_indices = @transform_2, window_bounds = array<i64: 128, 128>}, {pipeline_mode = #tpu.pipeline_mode<synchronous>, transform_indices = @transform_3, window_bounds = array<i64: 1, 128>}, {transform_indices = @transform_4, window_bounds = array<i64: 128, 128>}]} {
    %c0_i32 = arith.constant 0 : i32
    %0 = arith.cmpi eq, %arg1, %c0_i32 : i32
    %1 = arith.extui %0 : i1 to i32
    %c0_i32_0 = arith.constant 0 : i32
    %2 = arith.cmpi ne, %1, %c0_i32_0 : i32
    scf.if %2 {
      %cst_10 = arith.constant 0.000000e+00 : f32
      %12 = vector.broadcast %cst_10 : f32 to vector<128x128xf32>
      %c0_11 = arith.constant 0 : index
      %c0_12 = arith.constant 0 : index
      %13 = vector.load %arg7[%c0_11, %c0_12] : memref<128x128xf32, #tpu.memory_space<vmem>>, vector<128x128xf32>
      tpu.vector_store %arg7[%c0_11, %c0_12], %12 {strides = array<i32>} : memref<128x128xf32, #tpu.memory_space<vmem>>, vector<128x128xf32>,
    } else {
    }
    %c0 = arith.constant 0 : index
    %c0_1 = arith.constant 0 : index
    %3 = vector.load %arg7[%c0, %c0_1] : memref<128x128xf32, #tpu.memory_space<vmem>>, vector<128x128xf32>
    %c0_2 = arith.constant 0 : index
    %c0_3 = arith.constant 0 : index
    %4 = vector.load %arg2[%c0_2, %c0_3] : memref<128x128xbf16, #tpu.memory_space<vmem>>, vector<128x128xbf16>
    %c0_4 = arith.constant 0 : index
    %c0_5 = arith.constant 0 : index
    %5 = vector.load %arg3[%c0_4, %c0_5] : memref<128x128xbf16, #tpu.memory_space<vmem>>, vector<128x128xbf16>
    %cst = arith.constant dense<0.000000e+00> : vector<128x128xf32>
    %6 = tpu.matmul %4, %5, %cst {dimension_numbers = #tpu.dot_dimension_numbers<[1], [0], [0], [1], [0, 0, 1, 1], [], []>} : vector<128x128xbf16>, vector<128x128xbf16>, vector<128x128xf32> -> vector<128x128xf32>
    %7 = arith.addf %3, %6 : vector<128x128xf32>
    %c0_6 = arith.constant 0 : index
    %c0_7 = arith.constant 0 : index
    %8 = vector.load %arg7[%c0_6, %c0_7] : memref<128x128xf32, #tpu.memory_space<vmem>>, vector<128x128xf32>
    tpu.vector_store %arg7[%c0_6, %c0_7], %7 {strides = array<i32>} : memref<128x128xf32, #tpu.memory_space<vmem>>, vector<128x128xf32>,
    %c0_i32_8 = arith.constant 0 : i32
    %9 = arith.cmpi eq, %arg1, %c0_i32_8 : i32
    %10 = arith.extui %9 : i1 to i32
    %c0_i32_9 = arith.constant 0 : i32
    %11 = arith.cmpi ne, %10, %c0_i32_9 : i32
    scf.if %11 {
      %c0_10 = arith.constant 0 : index
      %c0_11 = arith.constant 0 : index
      %12 = vector.load %arg7[%c0_10, %c0_11] : memref<128x128xf32, #tpu.memory_space<vmem>>, vector<128x128xf32>
      %c0_12 = arith.constant 0 : index
      %c0_13 = arith.constant 0 : index
      %13 = vector.load %arg4[%c0_12, %c0_13] : memref<128x128xf32, #tpu.memory_space<vmem>>, vector<128x128xf32>
      %cst_14 = arith.constant dense<0.000000e+00> : vector<128x128xf32>
      %14 = tpu.matmul %12, %13, %cst_14 {dimension_numbers = #tpu.dot_dimension_numbers<[1], [0], [0], [1], [0, 0, 1, 1], [], []>} : vector<128x128xf32>, vector<128x128xf32>, vector<128x128xf32> -> vector<128x128xf32>
      %c0_15 = arith.constant 0 : index
      %c0_16 = arith.constant 0 : index
      %15 = vector.load %arg5[%c0_15, %c0_16] : memref<1x128xf32, #tpu.memory_space<vmem>>, vector<1x128xf32>
      %16 = vector.broadcast %15 : vector<1x128xf32> to vector<128x128xf32>
      %17 = arith.addf %14, %16 : vector<128x128xf32>
      %c0_17 = arith.constant 0 : index
      %c0_18 = arith.constant 0 : index
      %18 = vector.load %arg6[%c0_17, %c0_18] : memref<128x128xf32, #tpu.memory_space<vmem>>, vector<128x128xf32>
      tpu.vector_store %arg6[%c0_17, %c0_18], %17 {strides = array<i32>} : memref<128x128xf32, #tpu.memory_space<vmem>>, vector<128x128xf32>,
    } else {
    }
    return
  }
  func.func @transform_0(%arg0: i32, %arg1: i32) -> (i32, i32) {
    %c0_i32 = arith.constant 0 : i32
    return %arg0, %arg1 : i32, i32
  }
  func.func @transform_1(%arg0: i32, %arg1: i32) -> (i32, i32) {
    %c0_i32 = arith.constant 0 : i32
    %c0_i32_0 = arith.constant 0 : i32
    return %arg1, %c0_i32 : i32, i32
  }
  func.func @transform_2(%arg0: i32, %arg1: i32) -> (i32, i32) {
    %c0_i32 = arith.constant 0 : i32
    %c0_i32_0 = arith.constant 0 : i32
    %c0_i32_1 = arith.constant 0 : i32
    return %c0_i32, %c0_i32_0 : i32, i32
  }
  func.func @transform_3(%arg0: i32, %arg1: i32) -> (i32, i32) {
    %c0_i32 = arith.constant 0 : i32
    %c0_i32_0 = arith.constant 0 : i32
    %c0_i32_1 = arith.constant 0 : i32
    return %c0_i32, %c0_i32_0 : i32, i32
  }
  func.func @transform_4(%arg0: i32, %arg1: i32) -> (i32, i32) {
    %c0_i32 = arith.constant 0 : i32
    %c0_i32_0 = arith.constant 0 : i32
    return %arg0, %c0_i32 : i32, i32
  }
}

</mosaic_0001>

<bundles_post_ra>
// kernel: tpu_custom_call.1
= control target key start
LH: loop header
LB: loop body
LE: loop exit
PB: predicated region body
PF: predicated region fallthrough
CT: control target
= control target key end

     0   :  { %9 = vsyncpa [#allocation4], 0  ;;  %s974_s0 = inlined_call_operand.hbm [shape: bf16[128,128], index: 0, kind: input, shape index: {}]   ;;  %s975_s1 = inlined_call_operand.hbm [shape: bf16[128,128], index: 1, kind: input, shape index: {}]   ;;  %s976_s2 = inlined_call_operand.hbm [shape: f32[128,128], index: 2, kind: input, shape index: {}]   ;;  %s977_s3 = inlined_call_operand.vmem [shape: f32[1,128], index: 3, kind: input, shape index: {}]   ;;  %s978_s4 = inlined_call_operand.hbm [shape: f32[128,128], index: 4, kind: output, shape index: {}]  }
   0x1   :  { %10 = vsyncpa [#allocation7], 0 }
   0x2   :  { %11 = vsyncpa [#allocation5], 0  ;;  %s877_s15 = smov [#allocation6]   ;;  %s878_s17 = smov [#allocation3]  }
   0x3   :  { %s29_s16 = sshll.u32 %s877_s15, 4  ;;  %s17_s18 = sshll.u32 %s878_s17, 4  ;;  %s30_s16 = int_to_ptr.vmem [resolvable:$true] %s29_s16  ;;  %s910_s18 = int_to_ptr.vmem [resolvable:$true] %s17_s18 }
   0x4   :  { %s783_s21 = scalar_lea.hbm %s975_s1, 1024 }
   0x5   :  { %p784_p0 = scmp.ne.s32.totalorder %s975_s1, %s783_s21  ;;  %p787_p1 = scmp.lt.u32.totalorder %s783_s21, %s975_s1 }
   0x7   :  { %p789_p2 = pnand %p787_p1, %p784_p0 }
   0x9   :  { %792 = shalt.err (!%p789_p2)
}
   0xa   :  { %s793_s26 = scalar_lea.vmem %s30_s16, 1024  ;;  %p798_p4 = scmp.lt.s32.totalorder %s30_s16, %s30_s16 }
   0xb   :  { %p794_p3 = scmp.ne.s32.totalorder %s30_s16, %s793_s26  ;;  %p799_p5 = scmp.lt.s32.totalorder %s793_s26, %s793_s26 }
   0xd   :  { %p800_p6 = por %p799_p5, %p798_p4 }
   0xf   :  { %p801_p7 = pnand %p800_p6, %p794_p3 }
  0x11   :  { %804 = shalt.err (!%p801_p7)
}
  0x12   :  { %s879_s27 = smov 64   ;;  %s880_s28 = smov 4  }
  0x13   :  { %35 = dma.hbm_to_vmem [thread:$0]  %s975_s1, 1024, %s30_s16, [#allocation7], %s879_s27, %s879_s27, %s880_s28  }
  0x14   :  { %s805_s7 = scalar_lea.hbm %s974_s0, 1024 }
  0x15   :  { %p806_p8 = scmp.ne.s32.totalorder %s974_s0, %s805_s7  ;;  %p809_p9 = scmp.lt.u32.totalorder %s805_s7, %s974_s0 }
  0x17   :  { %p811_p10 = pnand %p809_p9, %p806_p8 }
  0x19   :  { %814 = shalt.err (!%p811_p10)
}
  0x1a   :  { %s815_s12 = scalar_lea.vmem %s910_s18, 1024  ;;  %p820_p12 = scmp.lt.s32.totalorder %s910_s18, %s910_s18 }
  0x1b   :  { %p816_p11 = scmp.ne.s32.totalorder %s910_s18, %s815_s12  ;;  %p821_p13 = scmp.lt.s32.totalorder %s815_s12, %s815_s12 }
  0x1d   :  { %p822_p0 = por %p821_p13, %p820_p12 }
  0x1f   :  { %p823_p1 = pnand %p822_p0, %p816_p11 }
  0x21   :  { %826 = shalt.err (!%p823_p1)
}
  0x22   :  { %23 = dma.hbm_to_vmem [thread:$0]  %s974_s0, 1024, %s910_s18, [#allocation4], %s879_s27, %s879_s27, %s880_s28  }
  0x23   :  { %s881_s14 = smov [#allocation8]   ;;  %s827_s19 = scalar_lea.hbm %s976_s2, 2048 }
  0x24   :  { %s41_s15 = sshll.u32 %s881_s14, 4  ;;  %p828_p2 = scmp.ne.s32.totalorder %s976_s2, %s827_s19  ;;  %s42_s15 = int_to_ptr.vmem [resolvable:$true] %s41_s15 }
  0x25   :  { %p831_p3 = scmp.lt.u32.totalorder %s827_s19, %s976_s2 }
  0x27   :  { %p833_p4 = pnand %p831_p3, %p828_p2 }
  0x29   :  { %836 = shalt.err (!%p833_p4)
}
  0x2a   :  { %s837_s24 = scalar_lea.vmem %s42_s15, 2048  ;;  %p842_p6 = scmp.lt.s32.totalorder %s42_s15, %s42_s15 }
  0x2b   :  { %p838_p5 = scmp.ne.s32.totalorder %s42_s15, %s837_s24  ;;  %p843_p7 = scmp.lt.s32.totalorder %s837_s24, %s837_s24 }
  0x2d   :  { %p844_p8 = por %p843_p7, %p842_p6 }
  0x2f   :  { %p845_p9 = pnand %p844_p8, %p838_p5 }
  0x31   :  { %848 = shalt.err (!%p845_p9)
}
  0x32   :  { %s882_s0 = smov 128   ;;  %s883_s18 = smov 8  }
  0x33   :  { %47 = dma.hbm_to_vmem [thread:$0]  %s976_s2, 2048, %s42_s15, [#allocation7], %s882_s0, %s882_s0, %s883_s18  }
  0x34   :  { %871 = dma.done.wait [#allocation4], 1024  }
  0x35   :  { %872 = vsyncadd [#allocation4], 4294966272 }
  0x36   :  { %873 = dma.done.wait [#allocation7], 3072  }
  0x37   :  { %874 = vsyncadd [#allocation7], 4294964224  ;;  %v767_v0 = vld [vmem:[#allocation6] sm:$0xff]   ;;  %v768_v1 = vld [vmem:[#allocation6 + $0x8] sm:$0xff]  }
  0x38   :  { %639 = vmatprep.subr.bf16.mxu0 %v767_v0  ;;  %v769_v2 = vld [vmem:[#allocation6 + $0x10] sm:$0xff]   ;;  %v770_v3 = vld [vmem:[#allocation6 + $0x18] sm:$0xff]   ;;  %v775_v4 = vld [vmem:[#allocation3] sm:$0xff]  }
  0x39   :  { %640 = vmatpush3.bf16.msra.mxu0 %v767_v0  ;;  %655 = vmatprep.mubr.bf16.mxu0 %v775_v4  ;;  %v771_v5 = vld [vmem:[#allocation6 + $0x20] sm:$0xff]   ;;  %v772_v6 = vld [vmem:[#allocation6 + $0x28] sm:$0xff]   ;;  %v374_v9 = vld [vmem:[#allocation8 + $0x10] sm:$0xff] }
  0x3a   :  { %641 = vmatprep.subr.bf16.mxu0 %v768_v1  ;;  %v372_v7 = vld [vmem:[#allocation8] sm:$0xff]  ;;  %v373_v8 = vld [vmem:[#allocation8 + $0x8] sm:$0xff]  ;;  %v375_v11 = vld [vmem:[#allocation8 + $0x18] sm:$0xff] }
  0x3b   :  { %v727_v10 = vpack.c.bf16 %v373_v8, %v372_v7  ;;  %v731_v12 = vpack.c.bf16 %v375_v11, %v374_v9  ;;  %v376_v13 = vld [vmem:[#allocation8 + $0x20] sm:$0xff]  ;;  %v377_v14 = vld [vmem:[#allocation8 + $0x28] sm:$0xff]  ;;  %v773_v15 = vld [vmem:[#allocation6 + $0x30] sm:$0xff]  }
  0x3c   :  { %v735_v16 = vpack.c.bf16 %v377_v14, %v376_v13  ;;  %v378_v17 = vld [vmem:[#allocation8 + $0x30] sm:$0xff]  ;;  %v379_v18 = vld [vmem:[#allocation8 + $0x38] sm:$0xff]  ;;  %v380_v21 = vld [vmem:[#allocation8 + $0x40] sm:$0xff] }
  0x3d   :  { %642 = vmatpush3.bf16.msra.mxu0 %v768_v1  ;;  %728 = vmatprep.subr.bf16.mxu1 %v727_v10  ;;  %v774_v19 = vld [vmem:[#allocation6 + $0x38] sm:$0xff]   ;;  %v739_v20 = vpack.c.bf16 %v379_v18, %v378_v17  ;;  %v381_v22 = vld [vmem:[#allocation8 + $0x48] sm:$0xff]  ;;  %v382_v25 = vld [vmem:[#allocation8 + $0x50] sm:$0xff] }
  0x3e   :  { %643 = vmatprep.subr.bf16.mxu0 %v769_v2  ;;  %730 = vmatpush3.bf16.msra.mxu1 %v727_v10  ;;  %v743_v23 = vpack.c.bf16 %v381_v22, %v380_v21  ;;  %v776_v24 = vld [vmem:[#allocation3 + $0x8] sm:$0xff]   ;;  %v383_v26 = vld [vmem:[#allocation8 + $0x58] sm:$0xff]  ;;  %v777_v27 = vld [vmem:[#allocation3 + $0x10] sm:$0xff]  }
  0x3f   :  { %732 = vmatprep.subr.bf16.mxu1 %v731_v12  ;;  %v747_v28 = vpack.c.bf16 %v383_v26, %v382_v25  ;;  %v384_v29 = vld [vmem:[#allocation8 + $0x60] sm:$0xff]  ;;  %v385_v30 = vld [vmem:[#allocation8 + $0x68] sm:$0xff]  ;;  %v778_v32 = vld [vmem:[#allocation3 + $0x18] sm:$0xff]  }
  0x40   :  { %v751_v31 = vpack.c.bf16 %v385_v30, %v384_v29  ;;  %v779_v33 = vld [vmem:[#allocation3 + $0x20] sm:$0xff]   ;;  %v780_v34 = vld [vmem:[#allocation3 + $0x28] sm:$0xff]   ;;  %v781_v35 = vld [vmem:[#allocation3 + $0x30] sm:$0xff]  }
  0x41   :  { %644 = vmatpush3.bf16.msra.mxu0 %v769_v2  ;;  %v782_v36 = vld [vmem:[#allocation3 + $0x38] sm:$0xff]   ;;  %v386_v37 = vld [vmem:[#allocation8 + $0x70] sm:$0xff]  ;;  %v590_v56 = vld [vmem:[%s977_s3] ss:$0 sm:$0xff]  ;;  %s884_s3 = smov [#allocation9]  }
  0x42   :  { %645 = vmatprep.subr.bf16.mxu0 %v770_v3  ;;  %734 = vmatpush3.bf16.msra.mxu1 %v731_v12  ;;  %v387_v38 = vld [vmem:[#allocation8 + $0x78] sm:$0xff]  ;;  %s561_s28 = sshll.u32 %s884_s3, 4  ;;  %s562_s28 = int_to_ptr.vmem [resolvable:$true] %s561_s28 }
  0x43   :  { %736 = vmatprep.subr.bf16.mxu1 %v735_v16  ;;  %v755_v39 = vpack.c.bf16 %v387_v38, %v386_v37  ;;  %s849_s29 = scalar_lea.vmem %s562_s28, 2048  ;;  %p854_p11 = scmp.lt.s32.totalorder %s562_s28, %s562_s28 }
  0x44   :  { %p850_p10 = scmp.ne.s32.totalorder %s562_s28, %s849_s29  ;;  %p855_p12 = scmp.lt.s32.totalorder %s849_s29, %s849_s29 }
  0x45   :  { %646 = vmatpush3.bf16.msra.mxu0 %v770_v3 }
  0x46   :  { %647 = vmatprep.subr.bf16.mxu0 %v771_v5  ;;  %738 = vmatpush3.bf16.msra.mxu1 %v735_v16  ;;  %p856_p13 = por %p855_p12, %p854_p11 }
  0x47   :  { %740 = vmatprep.subr.bf16.mxu1 %v739_v20 }
  0x48   :  { %p857_p0 = pnand %p856_p13, %p850_p10 }
  0x49   :  { %648 = vmatpush3.bf16.msra.mxu0 %v771_v5 }
  0x4a   :  { %649 = vmatprep.subr.bf16.mxu0 %v772_v6  ;;  %742 = vmatpush3.bf16.msra.mxu1 %v739_v20 }
  0x4b   :  { %744 = vmatprep.subr.bf16.mxu1 %v743_v23 }
  0x4d   :  { %650 = vmatpush3.bf16.msra.mxu0 %v772_v6 }
  0x4e   :  { %651 = vmatprep.subr.bf16.mxu0 %v773_v15  ;;  %746 = vmatpush3.bf16.msra.mxu1 %v743_v23 }
  0x4f   :  { %748 = vmatprep.subr.bf16.mxu1 %v747_v28 }
  0x51   :  { %652 = vmatpush3.bf16.msra.mxu0 %v773_v15 }
  0x52   :  { %653 = vmatprep.subr.bf16.mxu0 %v774_v19  ;;  %750 = vmatpush3.bf16.msra.mxu1 %v747_v28 }
  0x53   :  { %752 = vmatprep.subr.bf16.mxu1 %v751_v31 }
  0x55   :  { %654 = vmatpush3.bf16.msra.mxu0 %v774_v19 }
  0x56   :  { %754 = vmatpush3.bf16.msra.mxu1 %v751_v31 }
  0x57   :  { %756 = vmatprep.subr.bf16.mxu1 %v755_v39 }
  0x58   :  { %656 = vmatmul.mubr.bf16.vlgmr.msra.gmra.mrb[0].mxu0 %v776_v24 }
  0x59   :  { %659 = vmatprep.mubr.bf16.mxu0 %v777_v27 }
  0x5a   :  { %758 = vmatpush3.bf16.msra.mxu1 %v755_v39 }
  0x60   :  { %660 = vmatmul.mubr.bf16.gmra.mrb[4].mxu0 %v778_v32 }
  0x61   :  { %663 = vmatprep.mubr.bf16.mxu0 %v779_v33 }
  0x68   :  { %664 = vmatmul.mubr.bf16.gmra.mrb[8].mxu0 %v780_v34 }
  0x69   :  { %667 = vmatprep.mubr.bf16.mxu0 %v781_v35 }
  0x70   :  { %668 = vmatmul.mubr.bf16.gmra.mrb[12].mxu0 %v782_v36 }
 0x12b   :  { %v657_v40 = vpop.f32.mrb[0].mxu0 }
 0x12c   :  { %v258_v41 = vpop.f32.mrb[1].mxu0 }
 0x12d   :  { %v658_v42 = vpop.f32.mrb[2].mxu0  ;;  %703 = vmatprep.mubr.f32.mxu1 %v258_v41 }
 0x12e   :  { %v261_v43 = vpop.f32.mrb[3].mxu0 }
 0x12f   :  { %704 = vmatmul.mubr.f32.vlgmr.msra.gmra.mrb[0].mxu1 %v261_v43 }
 0x130   :  { %706 = vmatprep.mubr.f32.mxu1 %v657_v40 }
 0x133   :  { %v661_v44 = vpop.f32.mrb[4].mxu0  ;;  %707 = vmatmul.mubr.f32.gmra.mrb[2].mxu1 %v658_v42 }
 0x134   :  { %v274_v45 = vpop.f32.mrb[5].mxu0 }
 0x135   :  { %v662_v46 = vpop.f32.mrb[6].mxu0  ;;  %709 = vmatprep.mubr.f32.mxu1 %v274_v45 }
 0x136   :  { %v277_v47 = vpop.f32.mrb[7].mxu0 }
 0x137   :  { %710 = vmatmul.mubr.f32.gmra.mrb[4].mxu1 %v277_v47 }
 0x138   :  { %712 = vmatprep.mubr.f32.mxu1 %v661_v44 }
 0x13b   :  { %v665_v48 = vpop.f32.mrb[8].mxu0  ;;  %713 = vmatmul.mubr.f32.gmra.mrb[6].mxu1 %v662_v46 }
 0x13c   :  { %v290_v49 = vpop.f32.mrb[9].mxu0 }
 0x13d   :  { %v666_v50 = vpop.f32.mrb[10].mxu0  ;;  %715 = vmatprep.mubr.f32.mxu1 %v290_v49 }
 0x13e   :  { %v293_v51 = vpop.f32.mrb[11].mxu0 }
 0x13f   :  { %716 = vmatmul.mubr.f32.gmra.mrb[8].mxu1 %v293_v51 }
 0x140   :  { %718 = vmatprep.mubr.f32.mxu1 %v665_v48 }
 0x143   :  { %v669_v52 = vpop.f32.mrb[12].mxu0  ;;  %719 = vmatmul.mubr.f32.gmra.mrb[10].mxu1 %v666_v50 }
 0x144   :  { %v306_v53 = vpop.f32.mrb[13].mxu0 }
 0x145   :  { %v670_v54 = vpop.f32.mrb[14].mxu0  ;;  %721 = vmatprep.mubr.f32.mxu1 %v306_v53 }
 0x146   :  { %v309_v55 = vpop.f32.mrb[15].mxu0 }
 0x147   :  { %722 = vmatmul.mubr.f32.gmra.mrb[12].mxu1 %v309_v55 }
 0x148   :  { %724 = vmatprep.mubr.f32.mxu1 %v669_v52 }
 0x14b   :  { %725 = vmatmul.mubr.f32.gmra.mrb[14].mxu1 %v670_v54 }
 0x202   :  { %v705_v57 = vpop.f32.mrb[0].mxu1 }
 0x203   :  { %v467_v58 = vadd.f32 %v705_v57, %v590_v56  ;;  %v461_v59 = vpop.f32.mrb[1].mxu1 }
 0x204   :  { %v462_v60 = vadd.f32 %v590_v56, %v461_v59 }
 0x205   :  { %541 = vst [vmem:[#allocation9 + $0x8] sm:$0xff] %v467_v58 }
 0x206   :  { %540 = vst [vmem:[#allocation9] sm:$0xff] %v462_v60  ;;  %v708_v61 = vpop.f32.mrb[2].mxu1 }
 0x207   :  { %v477_v62 = vadd.f32 %v708_v61, %v590_v56  ;;  %v471_v63 = vpop.f32.mrb[3].mxu1 }
 0x208   :  { %v472_v0 = vadd.f32 %v590_v56, %v471_v63 }
 0x209   :  { %543 = vst [vmem:[#allocation9 + $0x18] sm:$0xff] %v477_v62 }
 0x20a   :  { %542 = vst [vmem:[#allocation9 + $0x10] sm:$0xff] %v472_v0  ;;  %v711_v1 = vpop.f32.mrb[4].mxu1 }
 0x20b   :  { %v487_v2 = vadd.f32 %v711_v1, %v590_v56  ;;  %v481_v3 = vpop.f32.mrb[5].mxu1 }
 0x20c   :  { %v482_v4 = vadd.f32 %v590_v56, %v481_v3 }
 0x20d   :  { %545 = vst [vmem:[#allocation9 + $0x28] sm:$0xff] %v487_v2 }
 0x20e   :  { %544 = vst [vmem:[#allocation9 + $0x20] sm:$0xff] %v482_v4  ;;  %v714_v5 = vpop.f32.mrb[6].mxu1 }
 0x20f   :  { %v497_v6 = vadd.f32 %v714_v5, %v590_v56  ;;  %v491_v7 = vpop.f32.mrb[7].mxu1 }
 0x210   :  { %v492_v8 = vadd.f32 %v590_v56, %v491_v7 }
 0x211   :  { %547 = vst [vmem:[#allocation9 + $0x38] sm:$0xff] %v497_v6 }
 0x212   :  { %546 = vst [vmem:[#allocation9 + $0x30] sm:$0xff] %v492_v8  ;;  %v717_v9 = vpop.f32.mrb[8].mxu1 }
 0x213   :  { %v507_v10 = vadd.f32 %v717_v9, %v590_v56  ;;  %v501_v11 = vpop.f32.mrb[9].mxu1 }
 0x214   :  { %v502_v12 = vadd.f32 %v590_v56, %v501_v11 }
 0x215   :  { %549 = vst [vmem:[#allocation9 + $0x48] sm:$0xff] %v507_v10 }
 0x216   :  { %548 = vst [vmem:[#allocation9 + $0x40] sm:$0xff] %v502_v12  ;;  %v720_v13 = vpop.f32.mrb[10].mxu1 }
 0x217   :  { %v517_v14 = vadd.f32 %v720_v13, %v590_v56  ;;  %v511_v15 = vpop.f32.mrb[11].mxu1 }
 0x218   :  { %v512_v16 = vadd.f32 %v590_v56, %v511_v15 }
 0x219   :  { %551 = vst [vmem:[#allocation9 + $0x58] sm:$0xff] %v517_v14 }
 0x21a   :  { %550 = vst [vmem:[#allocation9 + $0x50] sm:$0xff] %v512_v16  ;;  %v723_v17 = vpop.f32.mrb[12].mxu1 }
 0x21b   :  { %v527_v18 = vadd.f32 %v723_v17, %v590_v56  ;;  %v521_v19 = vpop.f32.mrb[13].mxu1 }
 0x21c   :  { %v522_v20 = vadd.f32 %v590_v56, %v521_v19 }
 0x21d   :  { %553 = vst [vmem:[#allocation9 + $0x68] sm:$0xff] %v527_v18 }
 0x21e   :  { %552 = vst [vmem:[#allocation9 + $0x60] sm:$0xff] %v522_v20  ;;  %v726_v21 = vpop.f32.mrb[14].mxu1 }
 0x21f   :  { %v537_v22 = vadd.f32 %v726_v21, %v590_v56  ;;  %v531_v23 = vpop.f32.mrb[15].mxu1 }
 0x220   :  { %v532_v24 = vadd.f32 %v590_v56, %v531_v23 }
 0x221   :  { %555 = vst [vmem:[#allocation9 + $0x78] sm:$0xff] %v537_v22 }
 0x222   :  { %554 = vst [vmem:[#allocation9 + $0x70] sm:$0xff] %v532_v24 }
 0x223   :  { %860 = shalt.err (!%p857_p0)
}
 0x224   :  { %s861_s6 = scalar_lea.hbm %s978_s4, 2048 }
 0x225   :  { %p862_p1 = scmp.ne.s32.totalorder %s978_s4, %s861_s6  ;;  %p865_p2 = scmp.lt.u32.totalorder %s861_s6, %s978_s4 }
 0x227   :  { %p867_p3 = pnand %p865_p2, %p862_p1 }
 0x229   :  { %870 = shalt.err (!%p867_p3)
}
 0x22a   :  { %567 = dma.vmem_to_hbm [thread:$0]  %s562_s28, 2048, %s978_s4, [#allocation5], %s882_s0, %s882_s0, %s883_s18  }
 0x22b   :  { %875 = dma.done.wait [#allocation5], 2048  }
 0x22c   :  { %876 = vsyncadd [#allocation5], 4294965248 }
 0x22d   :  { %571 = vsyncpa [#allocation4], 1 }
 0x22e   :  { %572 = vsyncpa [#allocation7], 1 }
 0x22f   :  { %573 = vsyncpa [#allocation5], 1 }

</bundles_post_ra>
